<compile_context>
chip_gen: v7x
topology: tpu7x:2x2x1
jax: 0.10.0
libtpu: 0.0.40
codegen_flags: <defaults>
</compile_context>

<pallas_src>
import functools

import jax
import jax.numpy as jnp
from jax.experimental import pallas as pl
from jax.experimental.pallas import tpu as pltpu

_LANES = 128
_SUBLANES = 8
_NEG_BIG = -1e30  # softmax-safe padding for unused class columns (built in f32)


def _round_up(x, n):
    return ((x + n - 1) // n) * n


def _padded_tile_bytes(rows, cols, dtype):
    """VMEM bytes of a (rows, cols) tile after Mosaic (8*packing, 128) padding."""
    itemsize = jnp.dtype(dtype).itemsize
    packing = max(1, 4 // itemsize)
    return _round_up(max(rows, 1), _SUBLANES * packing) * _round_up(max(cols, 1), _LANES) * itemsize


def _vmem_capacity_bytes():
    try:
        return int(pltpu.get_tpu_info().vmem_capacity_bytes)
    except Exception:
        return 64 * 1024 * 1024  # conservative default (v7x per-core VMEM)


def _family_encoder_kernel(feat_ref, w1_ref, b1_ref, w2_ref, b2_ref,
                           preds_ref, pooled_ref, acc_ref,
                           *, num_models, feat_dim, pooled_pad):
    # feat_ref   : [bt, F]   feature slab for base model m = program_id(1)
    # w1_ref     : [F, H]    b1_ref: [1, H]
    # w2_ref     : [H, Np]   b2_ref: [1, Np]    (Np = M padded to 128 lanes)
    # preds_ref  : [bt, Np]  pooled_ref: [bt, Fp]  acc_ref: [bt, F] f32 scratch
    m = pl.program_id(1)

    @pl.when(m == 0)
    def _():
        acc_ref[...] = jnp.zeros_like(acc_ref)

    # Per-model pooled-sum accumulation overlaps with the next feature DMA.
    acc_ref[...] += feat_ref[...].astype(jnp.float32)

    @pl.when(m == num_models - 1)
    def _():
        pooled = acc_ref[...] * (1.0 / num_models)

        # Lane-dense pooled store (zero-pad lanes; wrapper slices them off).
        if pooled_pad > feat_dim:
            zeros = jnp.zeros((pooled.shape[0], pooled_pad - feat_dim), jnp.float32)
            pooled_ref[...] = jnp.concatenate([pooled, zeros], axis=-1)
        else:
            pooled_ref[...] = pooled

        # MLP classifier: Linear -> ReLU -> (Dropout = identity) -> Linear.
        # Weights are fed to the MXU in their native dtype (no per-step casts).
        h = jnp.dot(pooled, w1_ref[...], preferred_element_type=jnp.float32)
        h = jnp.maximum(h + b1_ref[...], 0.0)
        logits = jnp.dot(h, w2_ref[...], preferred_element_type=jnp.float32)
        logits = logits + b2_ref[...]          # padded class columns hold -1e30

        # Numerically stable softmax over the lane-dense [bt, Np] slab.
        # Padded columns: exp(-1e30 - max) == 0, so they do not perturb the sum.
        # Exact divide so every row sums to 1 (approx reciprocal does not).
        row_max = jnp.max(logits, axis=-1, keepdims=True)
        e = jnp.exp(logits - row_max)
        denom = jnp.sum(e, axis=-1, keepdims=True)
        preds_ref[...] = (e / denom).astype(preds_ref.dtype)


def contrastive_family_encoder_forward(features, w1, b1, w2, b2, *, block_b=1024):
    """features: [B, M, F] -> (family_predictions [B, M], pooled_features [B, F])."""
    B, M, F = features.shape
    H = w1.shape[1]
    assert w1.shape == (F, H) and b1.shape == (1, H)
    assert w2.shape == (H, M) and b2.shape == (1, M)

    feat_dtype = features.dtype
    itemsize = jnp.dtype(feat_dtype).itemsize

    # --- lane-dense class dimension (bias padding built in f32: -1e30 safe) ----------
    n_pad = _round_up(M, _LANES)
    w2_p = jnp.zeros((H, n_pad), w2.dtype).at[:, :M].set(w2)
    b2_p = jnp.full((1, n_pad), _NEG_BIG, dtype=jnp.float32).at[:, :M].set(
        b2.astype(jnp.float32))
    b1_f = b1.astype(jnp.float32)

    # --- lane-dense pooled output ----------------------------------------------------
    f_pad = _round_up(F, _LANES)

    # --- generation-aware batch tile sizing (padded block shapes, padded weights) ----
    vmem_cap = _vmem_capacity_bytes()
    budget = int(0.4 * vmem_cap)

    # Resident weight/bias tiles (default pipelining allocates two buffers each).
    weight_bytes = 2 * (_padded_tile_bytes(F, H, w1.dtype)
                        + _padded_tile_bytes(1, H, jnp.float32)
                        + _padded_tile_bytes(H, n_pad, w2.dtype)
                        + _padded_tile_bytes(1, n_pad, jnp.float32))

    def tile_bytes(rows):
        return (2 * _padded_tile_bytes(rows, F, feat_dtype)          # feature stream
                + 2 * _padded_tile_bytes(rows, n_pad, jnp.float32)   # preds out
                + 2 * _padded_tile_bytes(rows, f_pad, jnp.float32)   # pooled out
                + _padded_tile_bytes(rows, F, jnp.float32))          # acc scratch

    bt = max(_SUBLANES, min(block_b, _round_up(B, _SUBLANES)))
    bt = _round_up(bt, _SUBLANES)
    while bt > _SUBLANES and weight_bytes + tile_bytes(bt) > budget:
        bt -= _SUBLANES
    # Keep >= 2 batch-grid steps when B allows it so both v7x TensorCores get work.
    if B >= 2 * _SUBLANES:
        bt = min(bt, _round_up(pl.cdiv(B, 2), _SUBLANES))
    bt = max(_SUBLANES, (bt // _SUBLANES) * _SUBLANES)

    b_pad = pl.cdiv(B, bt) * bt
    grid = (b_pad // bt, M)

    # Batch-major streamed layout: [M, B, F] so the (sublane, lane) tile is
    # (batch, feature).  (Production callers can emit features directly in this
    # layout to avoid the transpose.)
    feats_t = jnp.transpose(features, (1, 0, 2))
    if b_pad != B:
        feats_t = jnp.pad(feats_t, ((0, 0), (0, b_pad - B), (0, 0)))

    vmem_needed = weight_bytes + tile_bytes(bt)
    vmem_limit = int(min(int(0.75 * vmem_cap),
                         max(2 * vmem_needed, 32 * 1024 * 1024)))

    cost = pl.CostEstimate(
        flops=int(b_pad * M * F                      # pooling adds
                  + 2 * b_pad * F * H                # first GEMM
                  + 2 * b_pad * H * n_pad),          # second GEMM
        transcendentals=int(b_pad * n_pad),          # softmax exp
        bytes_accessed=int(b_pad * M * F * itemsize
                           + (F * H + H + H * n_pad + n_pad) * 4
                           + b_pad * (n_pad + f_pad) * 4),
    )

    kernel = functools.partial(_family_encoder_kernel,
                               num_models=M, feat_dim=F, pooled_pad=f_pad)

    preds_p, pooled_p = pl.pallas_call(
        kernel,
        out_shape=(
            jax.ShapeDtypeStruct((b_pad, n_pad), jnp.float32),  # lane-dense preds
            jax.ShapeDtypeStruct((b_pad, f_pad), jnp.float32),  # lane-dense pooled
        ),
        grid=grid,
        in_specs=[
            # Streamed per-(batch tile, base model) slab: (sublane, lane) = (bt, F).
            pl.BlockSpec((None, bt, F), lambda i, m: (m, i, 0)),
            # Weights / biases: constant index_map -> resident in VMEM, never re-DMA'd.
            pl.BlockSpec((F, H), lambda i, m: (0, 0)),
            pl.BlockSpec((1, H), lambda i, m: (0, 0)),
            pl.BlockSpec((H, n_pad), lambda i, m: (0, 0)),
            pl.BlockSpec((1, n_pad), lambda i, m: (0, 0)),
        ],
        out_specs=(
            # Same block index for every m -> outputs stay resident across the
            # reduction axis and are written back once per batch tile.
            pl.BlockSpec((bt, n_pad), lambda i, m: (i, 0)),
            pl.BlockSpec((bt, f_pad), lambda i, m: (i, 0)),
        ),
        scratch_shapes=[pltpu.VMEM((bt, F), jnp.float32)],
        compiler_params=pltpu.CompilerParams(
            dimension_semantics=("parallel", "arbitrary"),
            vmem_limit_bytes=vmem_limit,
        ),
        cost_estimate=cost,
    )(feats_t, w1, b1_f, w2_p, b2_p)

    # Strip batch padding and lane padding.
    return preds_p[:B, :M], pooled_p[:B, :F]


def _reference_forward(features, w1, b1, w2, b2):
    pooled = jnp.mean(features, axis=1)
    h = jnp.maximum(pooled @ w1 + b1, 0.0)
    logits = h @ w2 + b2
    return jax.nn.softmax(logits, axis=-1), pooled


if __name__ == "__main__":
    # Small, deterministic configuration.
    batch_size = 8
    num_base_models = 4
    feature_dim = 32
    hidden_dim = feature_dim // 2  # 16

    key = jax.random.PRNGKey(0)
    k_feat, k_w1, k_b1, k_w2, k_b2 = jax.random.split(key, 5)

    features = jax.random.normal(
        k_feat, (batch_size, num_base_models, feature_dim), dtype=jnp.float32)

    # Deterministic synthetic parameters (shapes from nn.Linear in __init__).
    w1 = jax.random.normal(k_w1, (feature_dim, hidden_dim), jnp.float32) * 0.1
    b1 = jax.random.normal(k_b1, (1, hidden_dim), jnp.float32) * 0.01
    w2 = jax.random.normal(k_w2, (hidden_dim, num_base_models), jnp.float32) * 0.1
    b2 = jax.random.normal(k_b2, (1, num_base_models), jnp.float32) * 0.01

    preds, pooled = contrastive_family_encoder_forward(features, w1, b1, w2, b2)
    preds = jax.block_until_ready(preds)
    pooled = jax.block_until_ready(pooled)

    # Verify against a pure-JAX reference.
    ref_preds, ref_pooled = _reference_forward(features, w1, b1, w2, b2)
    assert preds.shape == (batch_size, num_base_models)
    assert pooled.shape == (batch_size, feature_dim)
    assert jnp.allclose(preds, ref_preds, atol=1e-3, rtol=1e-3)
    assert jnp.allclose(pooled, ref_pooled, atol=1e-5, rtol=1e-5)
    assert jnp.allclose(jnp.sum(preds, axis=-1), 1.0, atol=1e-3)

    # TODO(synk): compute_contrastive_loss (training-only) not implemented; only forward() is required.
    print("KERNEL_OK")
</pallas_src>

<mosaic_0001>
module attributes {stable_mosaic.version = 11 : i64} {
  func.func @_family_encoder_kernel(%arg0: i32, %arg1: i32, %arg2: memref<1x8x32xf32, #tpu.memory_space<vmem>>, %arg3: memref<32x16xf32, #tpu.memory_space<vmem>>, %arg4: memref<1x16xf32, #tpu.memory_space<vmem>>, %arg5: memref<16x128xf32, #tpu.memory_space<vmem>>, %arg6: memref<1x128xf32, #tpu.memory_space<vmem>>, %arg7: memref<8x128xf32, #tpu.memory_space<vmem>>, %arg8: memref<8x128xf32, #tpu.memory_space<vmem>>, %arg9: memref<8x32xf32, #tpu.memory_space<vmem>>) attributes {dimension_semantics = [#tpu.dimension_semantics<parallel>, #tpu.dimension_semantics<arbitrary>], iteration_bounds = array<i64: 1, 4>, scalar_prefetch = 0 : i64, scratch_operands = 1 : i64, tpu.core_type = #tpu.core_type<tc>, window_params = [{transform_indices = @transform_0, window_bounds = array<i64: 1, 8, 32>}, {pipeline_mode = #tpu.pipeline_mode<synchronous>, transform_indices = @transform_1, window_bounds = array<i64: 32, 16>}, {pipeline_mode = #tpu.pipeline_mode<synchronous>, transform_indices = @transform_2, window_bounds = array<i64: 1, 16>}, {pipeline_mode = #tpu.pipeline_mode<synchronous>, transform_indices = @transform_3, window_bounds = array<i64: 16, 128>}, {pipeline_mode = #tpu.pipeline_mode<synchronous>, transform_indices = @transform_4, window_bounds = array<i64: 1, 128>}, {transform_indices = @transform_5, window_bounds = array<i64: 8, 128>}, {transform_indices = @transform_6, window_bounds = array<i64: 8, 128>}]} {
    %c0_i32 = arith.constant 0 : i32
    %0 = arith.cmpi eq, %arg1, %c0_i32 : i32
    %1 = arith.extui %0 : i1 to i32
    %c0_i32_0 = arith.constant 0 : i32
    %2 = arith.cmpi ne, %1, %c0_i32_0 : i32
    scf.if %2 {
      %cst = arith.constant 0.000000e+00 : f32
      %11 = vector.broadcast %cst : f32 to vector<8x32xf32>
      %c0_8 = arith.constant 0 : index
      %c0_9 = arith.constant 0 : index
      %12 = vector.load %arg9[%c0_8, %c0_9] : memref<8x32xf32, #tpu.memory_space<vmem>>, vector<8x32xf32>
      tpu.vector_store %arg9[%c0_8, %c0_9], %11 {strides = array<i32>} : memref<8x32xf32, #tpu.memory_space<vmem>>, vector<8x32xf32>,
    } else {
    }
    %c0 = arith.constant 0 : index
    %c0_1 = arith.constant 0 : index
    %3 = vector.load %arg9[%c0, %c0_1] : memref<8x32xf32, #tpu.memory_space<vmem>>, vector<8x32xf32>
    %c0_2 = arith.constant 0 : index
    %c0_3 = arith.constant 0 : index
    %c0_4 = arith.constant 0 : index
    %4 = vector.load %arg2[%c0_2, %c0_3, %c0_4] : memref<1x8x32xf32, #tpu.memory_space<vmem>>, vector<1x8x32xf32>
    %5 = vector.shape_cast %4 : vector<1x8x32xf32> to vector<8x32xf32>
    %6 = arith.addf %3, %5 : vector<8x32xf32>
    %c0_5 = arith.constant 0 : index
    %c0_6 = arith.constant 0 : index
    %7 = vector.load %arg9[%c0_5, %c0_6] : memref<8x32xf32, #tpu.memory_space<vmem>>, vector<8x32xf32>
    tpu.vector_store %arg9[%c0_5, %c0_6], %6 {strides = array<i32>} : memref<8x32xf32, #tpu.memory_space<vmem>>, vector<8x32xf32>,
    %c3_i32 = arith.constant 3 : i32
    %8 = arith.cmpi eq, %arg1, %c3_i32 : i32
    %9 = arith.extui %8 : i1 to i32
    %c0_i32_7 = arith.constant 0 : i32
    %10 = arith.cmpi ne, %9, %c0_i32_7 : i32
    scf.if %10 {
      %c0_8 = arith.constant 0 : index
      %c0_9 = arith.constant 0 : index
      %11 = vector.load %arg9[%c0_8, %c0_9] : memref<8x32xf32, #tpu.memory_space<vmem>>, vector<8x32xf32>
      %cst = arith.constant 2.500000e-01 : f32
      %12 = vector.broadcast %cst : f32 to vector<8x32xf32>
      %13 = arith.mulf %11, %12 : vector<8x32xf32>
      %cst_10 = arith.constant 0.000000e+00 : f32
      %14 = vector.broadcast %cst_10 : f32 to vector<8x96xf32>
      %15 = tpu.concatenate %13, %14 in 1 : vector<8x32xf32>, vector<8x96xf32> -> vector<8x128xf32>
      %c0_11 = arith.constant 0 : index
      %c0_12 = arith.constant 0 : index
      %16 = vector.load %arg8[%c0_11, %c0_12] : memref<8x128xf32, #tpu.memory_space<vmem>>, vector<8x128xf32>
      tpu.vector_store %arg8[%c0_11, %c0_12], %15 {strides = array<i32>} : memref<8x128xf32, #tpu.memory_space<vmem>>, vector<8x128xf32>,
      %c0_13 = arith.constant 0 : index
      %c0_14 = arith.constant 0 : index
      %17 = vector.load %arg3[%c0_13, %c0_14] : memref<32x16xf32, #tpu.memory_space<vmem>>, vector<32x16xf32>
      %cst_15 = arith.constant dense<0.000000e+00> : vector<8x16xf32>
      %18 = tpu.matmul %13, %17, %cst_15 {dimension_numbers = #tpu.dot_dimension_numbers<[1], [0], [0], [1], [0, 0, 1, 1], [], []>} : vector<8x32xf32>, vector<32x16xf32>, vector<8x16xf32> -> vector<8x16xf32>
      %c0_16 = arith.constant 0 : index
      %c0_17 = arith.constant 0 : index
      %19 = vector.load %arg4[%c0_16, %c0_17] : memref<1x16xf32, #tpu.memory_space<vmem>>, vector<1x16xf32>
      %20 = vector.broadcast %19 : vector<1x16xf32> to vector<8x16xf32>
      %21 = arith.addf %18, %20 : vector<8x16xf32>
      %cst_18 = arith.constant 0.000000e+00 : f32
      %22 = vector.broadcast %cst_18 : f32 to vector<8x16xf32>
      %23 = arith.maximumf %21, %22 : vector<8x16xf32>
      %c0_19 = arith.constant 0 : index
      %c0_20 = arith.constant 0 : index
      %24 = vector.load %arg5[%c0_19, %c0_20] : memref<16x128xf32, #tpu.memory_space<vmem>>, vector<16x128xf32>
      %cst_21 = arith.constant dense<0.000000e+00> : vector<8x128xf32>
      %25 = tpu.matmul %23, %24, %cst_21 {dimension_numbers = #tpu.dot_dimension_numbers<[1], [0], [0], [1], [0, 0, 1, 1], [], []>} : vector<8x16xf32>, vector<16x128xf32>, vector<8x128xf32> -> vector<8x128xf32>
      %c0_22 = arith.constant 0 : index
      %c0_23 = arith.constant 0 : index
      %26 = vector.load %arg6[%c0_22, %c0_23] : memref<1x128xf32, #tpu.memory_space<vmem>>, vector<1x128xf32>
      %27 = vector.broadcast %26 : vector<1x128xf32> to vector<8x128xf32>
      %28 = arith.addf %25, %27 : vector<8x128xf32>
      %cst_24 = arith.constant dense<0xFF800000> : vector<8xf32>
      %29 = vector.multi_reduction <maximumf>, %28, %cst_24 [1] : vector<8x128xf32> to vector<8xf32>
      %30 = vector.shape_cast %29 : vector<8xf32> to vector<8x1xf32>
      %31 = vector.broadcast %30 : vector<8x1xf32> to vector<8x128xf32>
      %32 = arith.subf %28, %31 : vector<8x128xf32>
      %33 = math.exp %32 : vector<8x128xf32>
      %cst_25 = arith.constant dense<0.000000e+00> : vector<8xf32>
      %34 = vector.multi_reduction <add>, %33, %cst_25 [1] : vector<8x128xf32> to vector<8xf32>
      %35 = vector.shape_cast %34 : vector<8xf32> to vector<8x1xf32>
      %36 = vector.broadcast %35 : vector<8x1xf32> to vector<8x128xf32>
      %37 = arith.divf %33, %36 : vector<8x128xf32>
      %c0_26 = arith.constant 0 : index
      %c0_27 = arith.constant 0 : index
      %38 = vector.load %arg7[%c0_26, %c0_27] : memref<8x128xf32, #tpu.memory_space<vmem>>, vector<8x128xf32>
      tpu.vector_store %arg7[%c0_26, %c0_27], %37 {strides = array<i32>} : memref<8x128xf32, #tpu.memory_space<vmem>>, vector<8x128xf32>,
    } else {
    }
    return
  }
  func.func @transform_0(%arg0: i32, %arg1: i32) -> (i32, i32, i32) {
    %c0_i32 = arith.constant 0 : i32
    %c0_i32_0 = arith.constant 0 : i32
    return %arg1, %arg0, %c0_i32 : i32, i32, i32
  }
  func.func @transform_1(%arg0: i32, %arg1: i32) -> (i32, i32) {
    %c0_i32 = arith.constant 0 : i32
    %c0_i32_0 = arith.constant 0 : i32
    %c0_i32_1 = arith.constant 0 : i32
    return %c0_i32, %c0_i32_0 : i32, i32
  }
  func.func @transform_2(%arg0: i32, %arg1: i32) -> (i32, i32) {
    %c0_i32 = arith.constant 0 : i32
    %c0_i32_0 = arith.constant 0 : i32
    %c0_i32_1 = arith.constant 0 : i32
    return %c0_i32, %c0_i32_0 : i32, i32
  }
  func.func @transform_3(%arg0: i32, %arg1: i32) -> (i32, i32) {
    %c0_i32 = arith.constant 0 : i32
    %c0_i32_0 = arith.constant 0 : i32
    %c0_i32_1 = arith.constant 0 : i32
    return %c0_i32, %c0_i32_0 : i32, i32
  }
  func.func @transform_4(%arg0: i32, %arg1: i32) -> (i32, i32) {
    %c0_i32 = arith.constant 0 : i32
    %c0_i32_0 = arith.constant 0 : i32
    %c0_i32_1 = arith.constant 0 : i32
    return %c0_i32, %c0_i32_0 : i32, i32
  }
  func.func @transform_5(%arg0: i32, %arg1: i32) -> (i32, i32) {
    %c0_i32 = arith.constant 0 : i32
    %c0_i32_0 = arith.constant 0 : i32
    return %arg0, %c0_i32 : i32, i32
  }
  func.func @transform_6(%arg0: i32, %arg1: i32) -> (i32, i32) {
    %c0_i32 = arith.constant 0 : i32
    %c0_i32_0 = arith.constant 0 : i32
    return %arg0, %c0_i32 : i32, i32
  }
}

</mosaic_0001>

<bundles_post_ra>
// kernel: tpu_custom_call.1
= control target key start
LH: loop header
LB: loop body
LE: loop exit
PB: predicated region body
PF: predicated region fallthrough
CT: control target
= control target key end

     0   :  { %12 = vsyncpa [#allocation4], 0  ;;  %s890_s0 = inlined_call_operand.vmem [shape: f32[4,8,32], index: 0, kind: input, shape index: {}]   ;;  %s891_s1 = inlined_call_operand.vmem [shape: f32[32,16], index: 1, kind: input, shape index: {}]   ;;  %s892_s2 = inlined_call_operand.vmem [shape: f32[1,16], index: 2, kind: input, shape index: {}]   ;;  %s893_s3 = inlined_call_operand.vmem [shape: f32[16,128], index: 3, kind: input, shape index: {}]   ;;  %s894_s4 = inlined_call_operand.vmem [shape: f32[1,128], index: 4, kind: input, shape index: {}]   ;;  %s895_s5 = inlined_call_operand.hbm [shape: f32[8,128], index: 5, kind: output, shape index: {0}]   ;;  %s896_s6 = inlined_call_operand.hbm [shape: f32[8,128], index: 6, kind: output, shape index: {1}]  }
   0x1   :  { %13 = vsyncpa [#allocation6], 0  ;;  %s775_s21 = smov 0   ;;  %s777_s22 = smov 0  }
   0x2   :  { %s779_s23 = smov 0  }
   0x3 LB: > { %s552_s24 = sadd.s32 4294967295, %s732_s23   ;;  %s28_s25 = sadd.s32 1, %s728_s22  ;;  %s732_s23 = sphi %s779_s23, %s19_s23   ;;  %s728_s22 = sphi %s777_s22, %s899_s22   ;;  %s724_s21 = sphi %s775_s21, %s898_s21  }
   0x4   : > { %p29_p0 = scmp.ge.s32.totalorder %s28_s25, 4  ;;  %p555_p1 = scmp.ge.s32.totalorder %s732_s23, 1 }
   0x5   : > { %p233_p2 = scmp.lt.s32.totalorder %s732_s23, 5 }
   0x6   : > { %s901_s25 = smov (%p29_p0, %s28_s25), 0 }
   0x7   : > { %p234_p3 = pnand %p555_p1, %p233_p2 }
   0x8   : > { %p260_p4 = scmp.lt.s32.totalorder (!%p234_p3), %s724_s21, 3  ;;  %p557_p5 = scmp.ne.s32.totalorder (!%p234_p3), %s724_s21, 0 }
   0x9   : > { %237 = sbr.rel (%p234_p3) target bundleno = 829 (0x33d), region = 40 }
  0x10   : > { %s261_s26 = scalar_select %p260_p4, %s724_s21, 3 }
  0x11   : > { %270 = sbr.rel (%p557_p5) target bundleno = 24 (0x18), region = 44  ;;  %vm271_vm0 = vcmask (!%p557_p5), 261120   ;;  %v734_v0 = vmov (!%p557_p5), 0.0  }
  0x12   : > { %s556_s27 = sshll.u32 %s261_s26, 3  ;;  %272 = vst.msk [vmem:[#allocation2] sm:$0xff] (!%p557_p5), %vm271_vm0, %v734_v0 }
  0x13   : > { %s266_s30 = scalar_lea.vmem %s890_s0, %s556_s27 }
  0x18 PF: > { %v274_v2 = vld [vmem:[%s266_s30] sm:$0xff]  ;;  %vm276_vm1 = vcmask 261120   ;;  %p558_p6 = scmp.ne.s32.totalorder %s724_s21, 3 }
  0x19   : > { %v273_v1 = vld [vmem:[#allocation2] sm:$0xff]  ;;  %v287_v5 = vld [vmem:[%s891_s1 + $0x8] sm:$0xff] (!%p558_p6)  ;;  %v288_v6 = vld [vmem:[%s891_s1 + $0x10] sm:$0xff] (!%p558_p6)  ;;  %v735_v7 = vmov (!%p558_p6), 0.0|0.0   ;;  %vm736_vm2 = vmmov (!%p558_p6), 0   ;;  %v737_v10 = vmov (!%p558_p6), 0.0  }
  0x1a   : > { %v275_v3 = vadd.f32 %v274_v2, %v273_v1  ;;  %281 = sbr.rel (%p558_p6) target bundleno = 781 (0x30d), region = 48  ;;  %v286_v4 = vld [vmem:[%s891_s1] sm:$0xff] (!%p558_p6)  ;;  %595 = vmatprep.subr.bf16.mxu0 (!%p558_p6), %v735_v7  ;;  %v289_v9 = vld [vmem:[%s891_s1 + $0x18] sm:$0xff] (!%p558_p6)  ;;  %585 = vmatprep.mubr.msk.f32.mxu0 (!%p558_p6), %vm736_vm2, %v737_v10  ;;  %v372_v16 = vld [vmem:[%s893_s3 + $0x8] sm:$0xff] (!%p558_p6)  ;;  %vm380_vm3 = vcmask (!%p558_p6), 130048  }
  0x1b   : > { %v596_v8 = vpack.c.bf16 (!%p558_p6), %v287_v5, %v286_v4  ;;  %601 = vmatprep.subr.bf16.mxu1 (!%p558_p6), %v735_v7  ;;  %592 = vmatprep.mubr.msk.f32.mxu1 (!%p558_p6), %vm736_vm2, %v737_v10  ;;  %v599_v13 = vpack.c.bf16 (!%p558_p6), %v289_v9, %v288_v6  ;;  %v371_v15 = vld [vmem:[%s893_s3] sm:$0xff] (!%p558_p6) }
  0x1c   : > { %277 = vst.msk [vmem:[#allocation2] sm:$0xff] %vm276_vm1, %v275_v3  ;;  %v602_v17 = vpack.c.bf16 (!%p558_p6), %v372_v16, %v371_v15  ;;  %v559_v18 = vld [vmem:[%s892_s2] ss:$0 sm:$0xff] (!%p558_p6) }
  0x1d   : > { %597 = vmatpush3.bf16.msra.mxu0 (!%p558_p6), %v596_v8  ;;  %v561_v23 = vld [vmem:[%s894_s4] ss:$0 sm:$0xff] (!%p558_p6) }
  0x1e   : > { %598 = vmatprep.subr.bf16.mxu0 (!%p558_p6), %v735_v7  ;;  %603 = vmatpush3.bf16.msra.mxu1 (!%p558_p6), %v602_v17 }
  0x21   : > { %600 = vmatpush3.bf16.msra.mxu0 %v599_v13 }
  0x23   : > { %v282_v11 = vld [vmem:[#allocation2] sm:$0xff] }
  0x24   : > { %v283_v12 = vmul.f32 0.25, %v282_v11 }
  0x26   : > { %v284_v14 = vsel %vm276_vm1, %v283_v12, 0.0  ;;  %586 = vmatmul.mubr.msk.f32.vlgmr.msra.gmra.mrb[0].mxu0 %vm276_vm1, %v283_v12 }
  0x27   : > { %285 = vst [vmem:[#allocation5] sm:$0xff] %v284_v14 }
  0xf9   : > { %v366_v19 = vpop.f32.mrb[0].mxu0 }
  0xfa   : > { %v367_v20 = vadd.f32 %v559_v18, %v366_v19  ;;  %v587_v21 = vpop.f32.mrb[1].mxu0 }
  0xfc   : > { %v370_v22 = vmax.f32 %v367_v20, 0.0 }
  0xfe   : > { %593 = vmatmul.mubr.msk.f32.vlgmr.msra.gmra.mrb[0].mxu1 %vm380_vm3, %v370_v22 }
 0x1d1   : > { %v450_v24 = vpop.f32.mrb[0].mxu1 }
 0x1d2   : > { %v451_v25 = vadd.f32 %v561_v23, %v450_v24  ;;  %v594_v26 = vpop.f32.mrb[1].mxu1 }
 0x1d4   : > { %454 = vmax.xlane.f32.xlu0 %v451_v25 }
 0x261   : > { %v455_v27 = vpop.xlane.xlu0 %454 }
 0x262   : > { %v456_v28 = vsub.f32 %v451_v25, %v455_v27 }
 0x264   : > { %v457_v29 = vmul.f32 1.442695, %v456_v28 }
 0x266   : > { %646 = vpow2.f32 %v457_v29 }
 0x270   : > { %v647_v30 = vpop.eup %646 }
 0x271   : > { %459 = vadd.xlane.f32.xlu0 %v647_v30 }
 0x2fe   : > { %v460_v31 = vpop.xlane.xlu0 %459 }
 0x2ff   : > { %648 = vrcp.f32 %v460_v31 }
 0x309   : > { %v649_v32 = vpop.eup %648 }
 0x30a   : > { %v462_v33 = vmul.f32 %v649_v32, %v647_v30 }
 0x30c   : > { %463 = vst [vmem:[#allocation3] sm:$0xff] %v462_v33 }
 0x30d PF: > { %p826_p7 = scmp.eq.s32.totalorder %s552_s24, 3  ;;  %s738_s28 = smov [#allocation3]  }
 0x30e   : > { %s473_s29 = sshll.u32 %s738_s28, 4  ;;  %s739_s30 = smov [#allocation5]   ;;  %s474_s29 = int_to_ptr.vmem [resolvable:$true] %s473_s29 }
 0x30f   : > { %s486_s7 = sshll.u32 %s739_s30, 4  ;;  %s650_s8 = scalar_lea.vmem %s474_s29, 128  ;;  %s830_s7 = int_to_ptr.vmem [resolvable:$true] %s486_s7 }
 0x310   : > { %p651_p8 = scmp.ne.s32.totalorder %s474_s29, %s650_s8  ;;  %p657_p11 = scmp.lt.s32.totalorder %s474_s29, %s474_s29 }
 0x311   : > { %p658_p12 = scmp.lt.s32.totalorder %s650_s8, %s650_s8 }
 0x312   : > { %p652_p9 = pnand %p651_p8, %p826_p7 }
 0x313   : > { %p659_p13 = por %p658_p12, %p657_p11 }
 0x314   : > { %p653_p10 = pneg %p652_p9 }
 0x316   : > { %p660_p0 = pnand %p659_p13, %p653_p10 }
 0x318   : > { %663 = shalt.err (!%p660_p0)
}
 0x319   : > { %s664_s10 = scalar_lea.hbm %s895_s5, 128 }
 0x31a   : > { %p665_p1 = scmp.ne.s32.totalorder %s895_s5, %s664_s10  ;;  %p670_p4 = scmp.lt.u32.totalorder %s664_s10, %s895_s5 }
 0x31c   : > { %p666_p2 = pnand %p665_p1, %p826_p7 }
 0x31e   : > { %p667_p3 = pneg %p666_p2 }
 0x320   : > { %p672_p5 = pnand %p670_p4, %p667_p3 }
 0x322   : > { %675 = shalt.err (!%p672_p5)
}
 0x323   : > { %605 = dma.vmem_to_hbm [thread:$0]  (%p826_p7), %s474_s29, 128, %s895_s5, [#allocation4]  }
 0x324   : > { %s676_s17 = scalar_lea.vmem %s830_s7, 128  ;;  %p683_p10 = scmp.lt.s32.totalorder %s830_s7, %s830_s7 }
 0x325   : > { %p677_p6 = scmp.ne.s32.totalorder %s830_s7, %s676_s17  ;;  %p684_p11 = scmp.lt.s32.totalorder %s676_s17, %s676_s17 }
 0x327   : > { %p678_p8 = pnand %p677_p6, %p826_p7  ;;  %p685_p12 = por %p684_p11, %p683_p10 }
 0x329   : > { %p679_p9 = pneg %p678_p8 }
 0x32b   : > { %p686_p13 = pnand %p685_p12, %p679_p9 }
 0x32d   : > { %689 = shalt.err (!%p686_p13)
}
 0x32e   : > { %s690_s20 = scalar_lea.hbm %s896_s6, 128 }
 0x32f   : > { %p691_p0 = scmp.ne.s32.totalorder %s896_s6, %s690_s20  ;;  %p696_p3 = scmp.lt.u32.totalorder %s690_s20, %s896_s6 }
 0x331   : > { %p692_p1 = pnand %p691_p0, %p826_p7 }
 0x333   : > { %p693_p2 = pneg %p692_p1 }
 0x335   : > { %p698_p4 = pnand %p696_p3, %p693_p2 }
 0x337   : > { %701 = shalt.err (!%p698_p4)
}
 0x338   : > { %607 = dma.vmem_to_hbm [thread:$0]  (%p826_p7), %s830_s7, 128, %s896_s6, [#allocation6]  }
 0x339   : > { %715 = dma.done.wait (%p826_p7), [#allocation4], 128  }
 0x33a   : > { %717 = vsyncadd (%p826_p7), [#allocation4], 4294967168 }
 0x33b   : > { %719 = dma.done.wait (%p826_p7), [#allocation6], 128  }
 0x33c   : > { %721 = vsyncadd (%p826_p7), [#allocation6], 4294967168 }
 0x33d PF: > { %s19_s23 = sadd.s32 1, %s732_s23   ;;  %s898_s21 = smov %s728_s22 }
 0x33e   : > { %p16_p5 = scmp.ge.s32.totalorder %s19_s23, 6   ;;  %s899_s22 = smov %s901_s25 }
 0x340   :  { %18 = sbr.rel (!%p16_p5) target bundleno = 3 (0x3), region = 85 }
 0x347   :  { %503 = vsyncpa [#allocation4], 1 }
 0x348   :  { %505 = vsyncpa [#allocation4 + $0x1], 1 }
 0x349   :  { %506 = vsyncpa [#allocation6], 1 }

</bundles_post_ra>
